<compile_context>
chip_gen: v6e
topology: v6e:2x2x1
jax: 0.10.0
libtpu: 0.0.40
codegen_flags: <defaults>
</compile_context>

<pallas_src>
import functools

import jax
import jax.numpy as jnp
import numpy as np
from jax.experimental import pallas as pl
from jax.experimental.pallas import tpu as pltpu


def _round_up(x, m):
    return ((x + m - 1) // m) * m


def elastic_arcface_kernel(emb_ref, ker_ref, inv_row_s_ref, inv_col_ref,
                           label_ref, cosm_ref, sinm_ref, out_ref, *, s, block_c):
    j = pl.program_id(0)   # class-tile index (outermost => weight tile stays
                           # resident across the entire inner batch sweep)

    # Raw operand tiles straight into the MXU (bf16 stays bf16); row/column
    # norms and the s-scale are folded into the f32 accumulator — all of them
    # were hoisted to the wrapper and arrive as tiny precomputed vectors.
    dot = jnp.dot(emb_ref[...], ker_ref[...], preferred_element_type=jnp.float32)
    # == clip(cos_theta, -1, 1) * s exactly (clamp commutes with a positive scale).
    cos_s = jnp.clip(dot * inv_row_s_ref[...] * inv_col_ref[...], -s, s)   # (TM, TN)

    # One-hot of the target class in *tile-local* column coordinates.
    label = label_ref[...]                                   # (TM, 1) int32, -1 => skip
    local_label = label - j * block_c                        # scalar shift, not per-element
    col = jax.lax.broadcasted_iota(jnp.int32, cos_s.shape, 1)
    hot = (col == local_label) & (label != -1)               # (TM, TN), <= 1 True per row

    # Per-row epilogue: gather the target cosine, do the trig on (TM, 1) only.
    # Exact identity cos(acos(x)+m) = x*cos(m) - sqrt(1-x^2)*sin(m) on [-1, 1].
    tgt = jnp.sum(jnp.where(hot, cos_s, 0.0), axis=1, keepdims=True) * (1.0 / s)
    sin_t = jnp.sqrt(jnp.maximum(1.0 - tgt * tgt, 0.0))
    new_s = (tgt * cosm_ref[...] - sin_t * sinm_ref[...]) * s               # (TM, 1)

    out_ref[...] = jnp.where(hot, new_s, cos_s).astype(out_ref.dtype)


def elastic_arcface(embeddings, weight, label, margin, *, s=64.0,
                    block_b=None, block_c=None, compute_dtype=None,
                    out_dtype=jnp.float32):
    B, D = embeddings.shape
    Dw, C = weight.shape
    assert D == Dw

    # ---- Hoisted quantities: computed ONCE in XLA, never per class tile ----
    emb32 = embeddings.astype(jnp.float32)
    w32 = weight.astype(jnp.float32)
    inv_row_s = s * jax.lax.rsqrt(jnp.sum(emb32 * emb32, axis=1, keepdims=True))  # (B, 1)
    inv_col = jax.lax.rsqrt(jnp.sum(w32 * w32, axis=0, keepdims=True))            # (1, C)
    margin32 = margin.reshape(B, 1).astype(jnp.float32)
    cos_m = jnp.cos(margin32)
    sin_m = jnp.sin(margin32)
    label2 = label.reshape(B, 1).astype(jnp.int32)

    if compute_dtype is not None:       # e.g. jnp.bfloat16 on v5e for f32 inputs
        embeddings = embeddings.astype(compute_dtype)
        weight = weight.astype(compute_dtype)

    # ---- Generation-aware VMEM budget (v7x: 64 MiB phys; v5e/v6e: 128 MiB) ----
    try:
        phys_vmem = pltpu.get_tpu_info().vmem_capacity_bytes
    except Exception:
        phys_vmem = 64 * 1024 * 1024     # conservative fallback (v7x)
    vmem_budget = min(int(phys_vmem) * 3 // 4, 100 * 1024 * 1024)

    # ---- Tile sizes ----
    if block_b is None:
        block_b = min(512, _round_up(B, 8))
    block_b = max(8, _round_up(block_b, 8))

    op_bytes = embeddings.dtype.itemsize
    out_bytes = jnp.dtype(out_dtype).itemsize
    if block_c is None:
        block_c = min(4096, _round_up(C, 128))
        while block_c > 128:
            need = 2 * (D * block_c * op_bytes            # weight tile (double-buffered)
                        + block_b * D * op_bytes          # embeddings tile
                        + block_b * block_c * out_bytes   # output tile
                        + block_c * 4)                    # inv_col tile
            if need <= vmem_budget:
                break
            block_c //= 2
    block_c = max(128, _round_up(block_c, 128))

    # ---- Pad to tile multiples (no divisibility requirement) ----
    Bp = _round_up(B, block_b)
    Cp = _round_up(C, block_c)
    if Bp != B:
        pb = Bp - B
        embeddings = jnp.pad(embeddings, ((0, pb), (0, 0)))
        inv_row_s = jnp.pad(inv_row_s, ((0, pb), (0, 0)))          # zeros => finite rows
        cos_m = jnp.pad(cos_m, ((0, pb), (0, 0)))
        sin_m = jnp.pad(sin_m, ((0, pb), (0, 0)))
        label2 = jnp.pad(label2, ((0, pb), (0, 0)), constant_values=-1)
    if Cp != C:
        pc = Cp - C
        weight = jnp.pad(weight, ((0, 0), (0, pc)))
        inv_col = jnp.pad(inv_col, ((0, 0), (0, pc)))              # zeros => finite cols

    # Class tiles OUTERMOST: the weight tile index only changes on the outer
    # axis, so each (D, block_c) slab is DMA'd from HBM exactly once.
    grid = (Cp // block_c, Bp // block_b)
    kern = functools.partial(elastic_arcface_kernel, s=float(s), block_c=block_c)

    out = pl.pallas_call(
        kern,
        out_shape=jax.ShapeDtypeStruct((Bp, Cp), out_dtype),
        grid_spec=pltpu.PrefetchScalarGridSpec(
            num_scalar_prefetch=0,
            grid=grid,
            in_specs=[
                pl.BlockSpec((block_b, D), lambda j, i: (i, 0)),   # embeddings
                pl.BlockSpec((D, block_c), lambda j, i: (0, j)),   # weight (resident along i)
                pl.BlockSpec((block_b, 1), lambda j, i: (i, 0)),   # s / ||emb_row||
                pl.BlockSpec((1, block_c), lambda j, i: (0, j)),   # 1 / ||W_col||
                pl.BlockSpec((block_b, 1), lambda j, i: (i, 0)),   # labels
                pl.BlockSpec((block_b, 1), lambda j, i: (i, 0)),   # cos(margin)
                pl.BlockSpec((block_b, 1), lambda j, i: (i, 0)),   # sin(margin)
            ],
            out_specs=pl.BlockSpec((block_b, block_c), lambda j, i: (i, j)),
        ),
        compiler_params=pltpu.CompilerParams(
            dimension_semantics=("parallel", "parallel"),
            vmem_limit_bytes=vmem_budget,
        ),
    )(embeddings, weight, inv_row_s, inv_col, label2, cos_m, sin_m)

    if Bp != B or Cp != C:
        out = out[:B, :C]
    return out


def elastic_arcface_ref(embeddings, weight, label, margin, *, s=64.0):
    """Pure-JAX reference mirroring the PyTorch forward (acos / cos form)."""
    emb_n = embeddings / jnp.linalg.norm(embeddings, axis=1, keepdims=True)
    ker_n = weight / jnp.linalg.norm(weight, axis=0, keepdims=True)
    cos_theta = jnp.clip(emb_n @ ker_n, -1.0, 1.0)
    theta = jnp.arccos(cos_theta)
    col = jnp.arange(cos_theta.shape[1])[None, :]
    hot = (col == label[:, None]) & (label[:, None] != -1)
    theta = theta + jnp.where(hot, margin[:, None], 0.0)
    return jnp.cos(theta) * s


if __name__ == "__main__":
    s_scale, m_mean, m_std = 64.0, 0.5, 0.05
    key = jax.random.PRNGKey(0)
    k1, k2, k3, k4, k5, k6 = jax.random.split(key, 6)

    # --- Case 1: tile-divisible shapes, explicit small tiles -> grid (2, 2) ---
    B, D, C = 16, 64, 256
    embeddings = jax.random.normal(k1, (B, D), dtype=jnp.float32)
    # nn.init.normal_(self.kernel, std=0.01), deterministic synthetic init
    weight = 0.01 * jax.random.normal(k2, (D, C), dtype=jnp.float32)
    # labels with some -1 entries (rows that receive no margin); targets land
    # in both class tiles to exercise the tile-local column offset
    label = jnp.array([3, -1, 7, 0, 200, -1, 2, 9,
                       100, 17, -1, 255, 42, 63, 128, 1], dtype=jnp.int32)
    # margin ~ N(m, std); sampled per-row host-side, invalid rows masked in-kernel
    margin = m_mean + m_std * jax.random.normal(k3, (B,), dtype=jnp.float32)

    out = elastic_arcface(embeddings, weight, label, margin, s=s_scale,
                          block_b=8, block_c=128)     # grid = (2, 2)
    out = jax.block_until_ready(out)
    ref = elastic_arcface_ref(embeddings, weight, label, margin, s=s_scale)
    np.testing.assert_allclose(np.asarray(out), np.asarray(ref),
                               rtol=1e-4, atol=2e-4)

    # --- Case 2: non-divisible shapes, default tile selection (pad + slice) ---
    B2, D2, C2 = 13, 64, 200
    emb2 = jax.random.normal(k4, (B2, D2), dtype=jnp.float32)
    w2 = 0.01 * jax.random.normal(k5, (D2, C2), dtype=jnp.float32)
    lab2 = jnp.array([5, -1, 199, 0, 64, 128, -1, 7, 33, 100, 1, 180, 2],
                     dtype=jnp.int32)
    mar2 = m_mean + m_std * jax.random.normal(k6, (B2,), dtype=jnp.float32)

    out2 = jax.block_until_ready(
        elastic_arcface(emb2, w2, lab2, mar2, s=s_scale))
    ref2 = elastic_arcface_ref(emb2, w2, lab2, mar2, s=s_scale)
    np.testing.assert_allclose(np.asarray(out2), np.asarray(ref2),
                               rtol=1e-4, atol=2e-4)

    print("KERNEL_OK")
</pallas_src>

<mosaic_0001>
module attributes {stable_mosaic.version = 11 : i64} {
  func.func @elastic_arcface_kernel(%arg0: i32, %arg1: i32, %arg2: memref<8x64xf32, #tpu.memory_space<vmem>>, %arg3: memref<64x128xf32, #tpu.memory_space<vmem>>, %arg4: memref<8x1xf32, #tpu.memory_space<vmem>>, %arg5: memref<1x128xf32, #tpu.memory_space<vmem>>, %arg6: memref<8x1xi32, #tpu.memory_space<vmem>>, %arg7: memref<8x1xf32, #tpu.memory_space<vmem>>, %arg8: memref<8x1xf32, #tpu.memory_space<vmem>>, %arg9: memref<8x128xf32, #tpu.memory_space<vmem>>) attributes {dimension_semantics = [#tpu.dimension_semantics<parallel>, #tpu.dimension_semantics<parallel>], iteration_bounds = array<i64: 2, 2>, scalar_prefetch = 0 : i64, scratch_operands = 0 : i64, tpu.core_type = #tpu.core_type<tc>, window_params = [{transform_indices = @transform_0, window_bounds = array<i64: 8, 64>}, {transform_indices = @transform_1, window_bounds = array<i64: 64, 128>}, {transform_indices = @transform_2, window_bounds = array<i64: 8, 1>}, {transform_indices = @transform_3, window_bounds = array<i64: 1, 128>}, {transform_indices = @transform_4, window_bounds = array<i64: 8, 1>}, {transform_indices = @transform_5, window_bounds = array<i64: 8, 1>}, {transform_indices = @transform_6, window_bounds = array<i64: 8, 1>}, {transform_indices = @transform_7, window_bounds = array<i64: 8, 128>}]} {
    %c0 = arith.constant 0 : index
    %c0_0 = arith.constant 0 : index
    %0 = vector.load %arg2[%c0, %c0_0] : memref<8x64xf32, #tpu.memory_space<vmem>>, vector<8x64xf32>
    %c0_1 = arith.constant 0 : index
    %c0_2 = arith.constant 0 : index
    %1 = vector.load %arg3[%c0_1, %c0_2] : memref<64x128xf32, #tpu.memory_space<vmem>>, vector<64x128xf32>
    %cst = arith.constant dense<0.000000e+00> : vector<8x128xf32>
    %2 = tpu.matmul %0, %1, %cst {dimension_numbers = #tpu.dot_dimension_numbers<[1], [0], [0], [1], [0, 0, 1, 1], [], []>} : vector<8x64xf32>, vector<64x128xf32>, vector<8x128xf32> -> vector<8x128xf32>
    %c0_3 = arith.constant 0 : index
    %c0_4 = arith.constant 0 : index
    %3 = vector.load %arg4[%c0_3, %c0_4] : memref<8x1xf32, #tpu.memory_space<vmem>>, vector<8x1xf32>
    %4 = vector.broadcast %3 : vector<8x1xf32> to vector<8x128xf32>
    %5 = arith.mulf %2, %4 : vector<8x128xf32>
    %c0_5 = arith.constant 0 : index
    %c0_6 = arith.constant 0 : index
    %6 = vector.load %arg5[%c0_5, %c0_6] : memref<1x128xf32, #tpu.memory_space<vmem>>, vector<1x128xf32>
    %7 = vector.broadcast %6 : vector<1x128xf32> to vector<8x128xf32>
    %8 = arith.mulf %5, %7 : vector<8x128xf32>
    %cst_7 = arith.constant -6.400000e+01 : f32
    %cst_8 = arith.constant 6.400000e+01 : f32
    %9 = vector.broadcast %cst_7 : f32 to vector<8x128xf32>
    %10 = arith.maximumf %9, %8 : vector<8x128xf32>
    %11 = vector.broadcast %cst_8 : f32 to vector<8x128xf32>
    %12 = arith.minimumf %11, %10 : vector<8x128xf32>
    %c0_9 = arith.constant 0 : index
    %c0_10 = arith.constant 0 : index
    %13 = vector.load %arg6[%c0_9, %c0_10] : memref<8x1xi32, #tpu.memory_space<vmem>>, vector<8x1xi32>
    %c128_i32 = arith.constant 128 : i32
    %14 = arith.muli %arg0, %c128_i32 : i32
    %15 = vector.broadcast %14 : i32 to vector<8x1xi32>
    %16 = arith.subi %13, %15 : vector<8x1xi32>
    %17 = tpu.iota {dimensions = array<i32: 1>} : vector<8x128xi32>
    %18 = vector.broadcast %16 : vector<8x1xi32> to vector<8x128xi32>
    %19 = arith.cmpi eq, %17, %18 : vector<8x128xi32>
    %c-1_i32 = arith.constant -1 : i32
    %20 = vector.broadcast %c-1_i32 : i32 to vector<8x1xi32>
    %21 = arith.cmpi ne, %13, %20 : vector<8x1xi32>
    %22 = vector.broadcast %21 : vector<8x1xi1> to vector<8x128xi1>
    %23 = arith.andi %19, %22 : vector<8x128xi1>
    %cst_11 = arith.constant 0.000000e+00 : f32
    %24 = vector.broadcast %cst_11 : f32 to vector<8x128xf32>
    %25 = arith.select %23, %12, %24 : vector<8x128xi1>, vector<8x128xf32>
    %cst_12 = arith.constant dense<0.000000e+00> : vector<8xf32>
    %26 = vector.multi_reduction <add>, %25, %cst_12 [1] : vector<8x128xf32> to vector<8xf32>
    %27 = vector.shape_cast %26 : vector<8xf32> to vector<8x1xf32>
    %cst_13 = arith.constant 1.562500e-02 : f32
    %28 = vector.broadcast %cst_13 : f32 to vector<8x1xf32>
    %29 = arith.mulf %27, %28 : vector<8x1xf32>
    %30 = arith.mulf %29, %29 : vector<8x1xf32>
    %cst_14 = arith.constant 1.000000e+00 : f32
    %31 = vector.broadcast %cst_14 : f32 to vector<8x1xf32>
    %32 = arith.subf %31, %30 : vector<8x1xf32>
    %cst_15 = arith.constant 0.000000e+00 : f32
    %33 = vector.broadcast %cst_15 : f32 to vector<8x1xf32>
    %34 = arith.maximumf %32, %33 : vector<8x1xf32>
    %35 = math.sqrt %34 : vector<8x1xf32>
    %c0_16 = arith.constant 0 : index
    %c0_17 = arith.constant 0 : index
    %36 = vector.load %arg7[%c0_16, %c0_17] : memref<8x1xf32, #tpu.memory_space<vmem>>, vector<8x1xf32>
    %37 = arith.mulf %29, %36 : vector<8x1xf32>
    %c0_18 = arith.constant 0 : index
    %c0_19 = arith.constant 0 : index
    %38 = vector.load %arg8[%c0_18, %c0_19] : memref<8x1xf32, #tpu.memory_space<vmem>>, vector<8x1xf32>
    %39 = arith.mulf %35, %38 : vector<8x1xf32>
    %40 = arith.subf %37, %39 : vector<8x1xf32>
    %cst_20 = arith.constant 6.400000e+01 : f32
    %41 = vector.broadcast %cst_20 : f32 to vector<8x1xf32>
    %42 = arith.mulf %40, %41 : vector<8x1xf32>
    %43 = vector.shape_cast %42 : vector<8x1xf32> to vector<8x1xf32>
    %44 = vector.broadcast %43 : vector<8x1xf32> to vector<8x128xf32>
    %45 = arith.select %23, %44, %12 : vector<8x128xi1>, vector<8x128xf32>
    %c0_21 = arith.constant 0 : index
    %c0_22 = arith.constant 0 : index
    %46 = vector.load %arg9[%c0_21, %c0_22] : memref<8x128xf32, #tpu.memory_space<vmem>>, vector<8x128xf32>
    tpu.vector_store %arg9[%c0_21, %c0_22], %45 {strides = array<i32>} : memref<8x128xf32, #tpu.memory_space<vmem>>, vector<8x128xf32>,
    return
  }
  func.func @transform_0(%arg0: i32, %arg1: i32) -> (i32, i32) {
    %c0_i32 = arith.constant 0 : i32
    %c0_i32_0 = arith.constant 0 : i32
    return %arg1, %c0_i32 : i32, i32
  }
  func.func @transform_1(%arg0: i32, %arg1: i32) -> (i32, i32) {
    %c0_i32 = arith.constant 0 : i32
    %c0_i32_0 = arith.constant 0 : i32
    return %c0_i32, %arg0 : i32, i32
  }
  func.func @transform_2(%arg0: i32, %arg1: i32) -> (i32, i32) {
    %c0_i32 = arith.constant 0 : i32
    %c0_i32_0 = arith.constant 0 : i32
    return %arg1, %c0_i32 : i32, i32
  }
  func.func @transform_3(%arg0: i32, %arg1: i32) -> (i32, i32) {
    %c0_i32 = arith.constant 0 : i32
    %c0_i32_0 = arith.constant 0 : i32
    return %c0_i32, %arg0 : i32, i32
  }
  func.func @transform_4(%arg0: i32, %arg1: i32) -> (i32, i32) {
    %c0_i32 = arith.constant 0 : i32
    %c0_i32_0 = arith.constant 0 : i32
    return %arg1, %c0_i32 : i32, i32
  }
  func.func @transform_5(%arg0: i32, %arg1: i32) -> (i32, i32) {
    %c0_i32 = arith.constant 0 : i32
    %c0_i32_0 = arith.constant 0 : i32
    return %arg1, %c0_i32 : i32, i32
  }
  func.func @transform_6(%arg0: i32, %arg1: i32) -> (i32, i32) {
    %c0_i32 = arith.constant 0 : i32
    %c0_i32_0 = arith.constant 0 : i32
    return %arg1, %c0_i32 : i32, i32
  }
  func.func @transform_7(%arg0: i32, %arg1: i32) -> (i32, i32) {
    %c0_i32 = arith.constant 0 : i32
    return %arg1, %arg0 : i32, i32
  }
}

</mosaic_0001>

<bundles_post_ra>
// kernel: tpu_custom_call.1
= control target key start
LH: loop header
LB: loop body
LE: loop exit
PB: predicated region body
PF: predicated region fallthrough
CT: control target
= control target key end

     0   :  { %s1312_s0 = inlined_call_operand.vmem [shape: f32[16,64], index: 0, kind: input, shape index: {}]   ;;  %s1313_s1 = inlined_call_operand.hbm [shape: f32[64,256], index: 1, kind: input, shape index: {}]   ;;  %s1314_s2 = inlined_call_operand.vmem [shape: f32[16,1], index: 2, kind: input, shape index: {}]   ;;  %s1315_s3 = inlined_call_operand.vmem [shape: f32[1,256], index: 3, kind: input, shape index: {}]   ;;  %s1316_s4 = inlined_call_operand.vmem [shape: s32[16,1], index: 4, kind: input, shape index: {}]   ;;  %s1317_s5 = inlined_call_operand.vmem [shape: f32[16,1], index: 5, kind: input, shape index: {}]   ;;  %s1318_s6 = inlined_call_operand.vmem [shape: f32[16,1], index: 6, kind: input, shape index: {}]   ;;  %s1319_s7 = inlined_call_operand.hbm [shape: f32[16,256], index: 7, kind: output, shape index: {}]  }
   0x1   :  { %1327 = sst [smem:[#allocation14_spill]] %s1318_s6 }
   0x2   :  { %1328 = sst [smem:[#allocation15_spill]] %s1319_s7 }
   0x3   :  { %12 = vsyncpa [#allocation3], 0 }
   0x4   :  { %14 = vsyncpa [#allocation3 + $0x1], 0 }
   0x5   :  { %15 = vsyncpa [#allocation4], 0 }
   0x6   :  { %17 = vsyncpa [#allocation4 + $0x1], 0  ;;  %s1082_s24 = smov 0   ;;  %s1084_s25 = smov 0  }
   0x7   :  { %s1086_s26 = smov 0   ;;  %s1088_s27 = smov 0  }
   0x8   :  { %s1090_s28 = smov 0   ;;  %s1092_s29 = smov 0  }
   0x9   :  { %s1094_s30 = smov 0   ;;  %s1096_s8 = smov 0  }
   0xa   :  { %s1098_s9 = smov 0   ;;  %s1100_s10 = smov 0  }
   0xb   :  { %s1102_s11 = smov 0  }
   0xc LB: > { %1329 = sst [smem:[#allocation8_spill]] %s1024_s9  ;;  %s721_s12 = sadd.s32 4294967295, %s1032_s11   ;;  %s1032_s11 = sphi %s1102_s11, %s23_s11   ;;  %s1028_s10 = sphi %s1100_s10, %s1349_s10   ;;  %s1024_s9 = sphi %s1098_s9, %s1348_s9   ;;  %s1020_s8 = sphi %s1096_s8, %s1347_s8   ;;  %s1016_s30 = sphi %s1094_s30, %s1346_s30   ;;  %s1012_s29 = sphi %s1092_s29, %s1355_s29   ;;  %s1008_s28 = sphi %s1090_s28, %s1354_s28   ;;  %s1004_s27 = sphi %s1088_s27, %s1353_s27   ;;  %s1000_s26 = sphi %s1086_s26, %s1352_s26   ;;  %s996_s25 = sphi %s1084_s25, %s1351_s25   ;;  %s992_s24 = sphi %s1082_s24, %s1350_s24  }
   0xd   : > { %1330 = sst [smem:[#allocation9_spill]] %s1028_s10  ;;  %s722_s13 = sadd.s32 4294967294, %s1032_s11  }
   0xe   : > { %s32_s14 = sadd.s32 1, %s1024_s9  ;;  %s35_s15 = sadd.s32 1, %s1028_s10 }
   0xf   : > { %p33_p0 = scmp.ge.s32.totalorder %s32_s14, 2  ;;  %s68_s16 = sadd.s32 1, %s1012_s29 }
  0x10   : > { %p75_p1 = scmp.ne.s32.totalorder %s1012_s29, %s1008_s28  ;;  %p76_p2 = scmp.eq.s32.totalorder %s1032_s11, 0 }
  0x11   : > { %s1357_s14 = smov (%p33_p0, %s32_s14), 0  ;;  %s1359_s15 = smov (!%p33_p0, %s35_s15), %s1028_s10 }
  0x12   : > { %1331 = sst [smem:[#allocation10_spill]] %s1357_s14  ;;  %p1146_p3 = por %p76_p2, %p75_p1 }
  0x13   : > { %p81_p4 = scmp.ne.s32.totalorder %s1008_s28, %s1004_s27  ;;  %p37_p5 = scmp.ge.s32.totalorder %s1359_s15, 2 }
  0x14   : > { %p82_p6 = scmp.eq.s32.totalorder %s721_s12, 0  ;;  %s221_s18 = ssub.s32 %s1024_s9, %s1357_s14 }
  0x15   : > { %s226_s19 = sadd.s32 1, %s1000_s26  ;;  %s1361_s15 = smov (%p37_p5, %s1359_s15), 0 }
  0x16   : > { %1333 = sst [smem:[#allocation11_spill]] %s1361_s15  ;;  %p1156_p7 = por %p82_p6, %p81_p4 }
  0x17   : > { %p236_p8 = scmp.ne.s32.totalorder %s1000_s26, %s996_s25  ;;  %s65_s21 = ssub.s32 %s1028_s10, %s1361_s15 }
  0x18   : > { %p237_p9 = scmp.eq.s32.totalorder %s721_s12, 3  ;;  %p66_p10 = scmp.eq.s32.totalorder %s65_s21, 0 }
  0x19   : > { %s223_s22 = sor.u32 %s221_s18, %s65_s21  ;;  %p242_p13 = scmp.ne.s32.totalorder %s996_s25, %s992_s24 }
  0x1a   : > { %p224_p11 = scmp.eq.s32.totalorder %s223_s22, 0  ;;  %p1164_p12 = por %p237_p9, %p236_p8 }
  0x1b   : > { %s1169_s27 = scalar_select %p66_p10, %s1012_s29, %s68_s16  }
  0x1c   : > { %s1335_s23 = scalar_select %p1164_p12, 1, 0 }
  0x1d   : > { %1337 = sst [smem:[#allocation13_spill]] %s1169_s27  ;;  %p243_p0 = scmp.eq.s32.totalorder %s722_s13, 3 }
  0x1e   : > { %1336 = sst [smem:[#allocation12_spill]] %s1335_s23  ;;  %p784_p1 = scmp.lt.s32.totalorder %s1032_s11, 4 }
  0x1f   : > { %s1172_s14 = scalar_select %p224_p11, %s1000_s26, %s226_s19  }
  0x20   : > { %p1177_p2 = por %p243_p0, %p242_p13  ;;  %s270_s12 = sand.u32 1, %s1012_s29  }
  0x21   : > { %s725_s15 = sshll.u32 %s270_s12, 6  ;;  %s726_s18 = sshll.u32 %s1028_s10, 7 }
  0x22   : > { %s279_s7 = scalar_lea.hbm %s1313_s1, %s726_s18  ;;  %s274_s6 = scalar_lea.vmem [#allocation2], %s725_s15 }
  0x23   : > { %s280_s23 = sshll.u32 %s274_s6, 4  ;;  %p1188_p4 = pnand %p784_p1, %p1146_p3  ;;  %s281_s23 = int_to_ptr.vmem [resolvable:$true] %s280_s23 }
  0x24   : > { %s271_s13 = scalar_lea.sflag [#allocation3], %s270_s12  ;;  %s897_s19 = scalar_lea.vmem %s281_s23, 1024 }
  0x25   : > { %p886_p5 = pneg %p1188_p4  ;;  %p898_p6 = scmp.ne.s32.totalorder %s281_s23, %s897_s19 }
  0x26   : > { %s1034_s10 = smov [#allocation2]  }
  0x27   : > { %p900_p8 = pnand %p898_p6, %p886_p5  ;;  %s902_s27 = sshll.u32 %s1034_s10, 4  ;;  %s903_s27 = int_to_ptr.vmem [resolvable:$false] %s902_s27 }
  0x28   : > { %s904_s18 = scalar_lea.vmem %s903_s27, 2048  ;;  %p905_p10 = scmp.lt.s32.totalorder %s281_s23, %s903_s27 }
  0x29   : > { %p901_p9 = pneg %p900_p8  ;;  %p906_p11 = scmp.lt.s32.totalorder %s904_s18, %s897_s19 }
  0x2b   : > { %p907_p13 = por %p906_p11, %p905_p10 }
  0x2d   : > { %p908_p0 = pnand %p907_p13, %p901_p9 }
  0x2f   : > { %911 = shalt.err (!%p908_p0)
}
  0x30   : > { %s1035_s6 = smov 256   ;;  %s1036_s15 = smov 128  }
  0x31   : > { %s1037_s17 = smov 8   ;;  %p727_p3 = scmp.ge.s32.totalorder %s1032_s11, 1 }
  0x32   : > { %779 = dma.hbm_to_vmem [thread:$0]  (!%p1188_p4), %s279_s7, 1024, %s281_s23, %s271_s13, %s1035_s6, %s1036_s15, %s1037_s17  }
  0x33   : > { %p322_p1 = scmp.lt.s32.totalorder %s1032_s11, 5 }
  0x35   : > { %p323_p5 = pnand %p727_p3, %p322_p1 }
  0x36   : > { %s328_s10 = sand.u32 (!%p323_p5), 1, %s1008_s28  }
  0x37   : > { %326 = sbr.rel (%p323_p5) target bundleno = 587 (0x24b), region = 48  ;;  %s728_s27 = sshll.u32 (!%p323_p5), %s328_s10, 6 }
  0x38   : > { %s329_s12 = scalar_lea.sflag (!%p323_p5), [#allocation3], %s328_s10  ;;  %s1199_s21 = scalar_lea.vmem (!%p323_p5), [#allocation2], %s728_s27 }
  0x3c   : > { %983 = dma.done.wait (%p1156_p7), %s329_s12, 1024  }
  0x3d   : > { %985 = vsyncadd (%p1156_p7), %s329_s12, 4294966272  ;;  %p386_p4 = scmp.lt.s32.totalorder %s1016_s30, 1  ;;  %v1038_v0 = vmov 0.0   ;;  %vm1039_vm0 = vmmov 0   ;;  %v1040_v1 = vmov 0   ;;  %s738_s23 = sshll.u32 %s1020_s8, 7  ;;  %v513_v17 = vlaneseq }
  0x3e   : > { %753 = vmatprep.subr.mxu0 %v1038_v0  ;;  %769 = vmatprep.mubr.msk.f32.mxu0 %vm1039_vm0, %v1038_v0  ;;  %v417_v2 = vld [vmem:[%s1199_s21 + $0x38] sm:$0xff]  ;;  %v416_v3 = vld [vmem:[%s1199_s21 + $0x30] sm:$0xff]  ;;  %v511_v4 = vstv %s738_s23  ;;  %v415_v5 = vld [vmem:[%s1199_s21 + $0x28] sm:$0xff]  ;;  %vm418_vm2 = vcmask 523264   ;;  %p394_p7 = scmp.lt.s32.totalorder %s1020_s8, 1  ;;  %s1342_s18 = sld [smem:[#allocation14_spill]] }
  0x3f   : > { %s387_s7 = scalar_select %p386_p4, %s1016_s30, 1  ;;  %880 = vset.pattern.permute.xlu0 %v1040_v1  ;;  %881 = vset.pattern.permute.xlu1 %v1040_v1  ;;  %v414_v8 = vld [vmem:[%s1199_s21 + $0x20] sm:$0xff]  ;;  %v413_v11 = vld [vmem:[%s1199_s21 + $0x18] sm:$0xff]  ;;  %v412_v12 = vld [vmem:[%s1199_s21 + $0x10] sm:$0xff]  ;;  %v514_v19 = vand.u32 127, %v513_v17 }
  0x40   : > { %754 = vmatpush3.msra.mxu0 %v417_v2  ;;  %v411_v13 = vld [vmem:[%s1199_s21 + $0x8] sm:$0xff]  ;;  %v410_v14 = vld [vmem:[%s1199_s21] sm:$0xff]  ;;  %s395_s27 = scalar_select %p394_p7, %s1020_s8, 1 }
  0x41   : > { %s1208_s22 = sshll.u32 %s387_s7, 3  ;;  %755 = vmatprep.subr.mxu0 %v1038_v0  ;;  %s383_s17 = sand.u32 1, %s996_s25  }
  0x42   : > { %s393_s13 = scalar_lea.vmem %s1314_s2, %s1208_s22  ;;  %s400_s6 = scalar_lea.vmem %s1316_s4, %s1208_s22  ;;  %756 = vmatpush3.msra.mxu0 %v416_v3 }
  0x43   : > { %v492_v6 = vld [vmem:[%s393_s13] sm:$0xff]  ;;  %757 = vmatprep.subr.mxu0 %v1038_v0  ;;  %s389_s10 = scalar_lea.vmem %s1312_s0, %s1208_s22  ;;  %s396_s23 = scalar_lea.vmem %s1315_s3, %s395_s27 }
  0x44   : > { %v509_v7 = vld [vmem:[%s400_s6] sm:$0xff]  ;;  %495 = vperm.xlu0 %880, %v492_v6   ;;  %758 = vmatpush3.msra.mxu0 %v415_v5  ;;  %s404_s16 = scalar_lea.vmem %s1317_s5, %s1208_s22  ;;  %s408_s6 = scalar_lea.vmem %s1342_s18, %s1208_s22 }
  0x45   : > { %vm519_vm1 = vcmp.ne.s32.totalorder %v509_v7, 4294967295  ;;  %v512_v9 = vsub.s32 %v509_v7, %v511_v4  ;;  %759 = vmatprep.subr.mxu0 %v1038_v0  ;;  %v409_v15 = vld [vmem:[%s389_s10] sm:$0xff]  ;;  %s729_s10 = sshll.u32 %s383_s17, 3  ;;  %s740_s22 = sshll.u32 %s1016_s30, 1 }
  0x46   : > { %v520_v10 = vsel %vm519_vm1, 1, %v1040_v1  ;;  %760 = vmatpush3.msra.mxu0 %v414_v8  ;;  %v736_v22 = vld [vmem:[%s396_s23] ss:$0 sm:$0xff]  ;;  %s565_s27 = sadd.s32 %s1020_s8, %s740_s22  ;;  %s385_s7 = scalar_lea.vmem [#allocation5], %s729_s10 }
  0x47   : > { %522 = vperm.xlu1 %881, %v520_v10   ;;  %761 = vmatprep.subr.mxu0 %v1038_v0  ;;  %v540_v36 = vld [vmem:[%s404_s16] sm:$0xff]  ;;  %s741_s12 = sshll.u32 %s565_s27, 7  ;;  %s569_s23 = sshll.u32 %s385_s7, 4  ;;  %s570_s23 = int_to_ptr.vmem [resolvable:$true] %s569_s23 }
  0x48   : > { %516 = vperm.xlu0 %880, %v512_v9   ;;  %762 = vmatpush3.msra.mxu0 %v413_v11  ;;  %v542_v37 = vld [vmem:[%s408_s6] sm:$0xff]  ;;  %s1344_s16 = sld [smem:[#allocation15_spill]]  ;;  %s554_s19 = scalar_lea.sflag [#allocation4], %s383_s17 }
  0x49   : > { %763 = vmatprep.subr.mxu0 %v1038_v0  ;;  %s912_s18 = scalar_lea.vmem %s570_s23, 128  ;;  %s1041_s30 = smov [#allocation5]  }
  0x4a   : > { %764 = vmatpush3.msra.mxu0 %v412_v12  ;;  %p913_p6 = scmp.ne.s32.totalorder %s570_s23, %s912_s18  ;;  %s916_s8 = sshll.u32 %s1041_s30, 4  ;;  %s917_s8 = int_to_ptr.vmem [resolvable:$false] %s916_s8 }
  0x4b   : > { %765 = vmatprep.subr.mxu0 %v1038_v0  ;;  %s918_s6 = scalar_lea.vmem %s917_s8, 256  ;;  %p919_p10 = scmp.lt.s32.totalorder %s570_s23, %s917_s8 }
  0x4c   : > { %766 = vmatpush3.msra.mxu0 %v411_v13  ;;  %p914_p8 = pnand %p913_p6, %p1164_p12  ;;  %p920_p11 = scmp.lt.s32.totalorder %s918_s6, %s912_s18 }
  0x4d   : > { %767 = vmatprep.subr.mxu0 %v1038_v0 }
  0x4e   : > { %768 = vmatpush3.msra.mxu0 %v410_v14  ;;  %s1255_s13 = scalar_lea.hbm %s1344_s16, %s741_s12  ;;  %p915_p9 = pneg %p914_p8 }
  0x4f   : > { %770 = vmatmul.mubr.msk.f32.vlgmr.msra.gmra.mxu0 %vm418_vm2, %v409_v15  ;;  %p921_p13 = por %p920_p11, %p919_p10 }
  0x51   : > { %p922_p0 = pnand %p921_p13, %p915_p9 }
  0xbf   : > { %v496_v16 = vpop.permute.xlu0 %495 }
  0xc2   : > { %v523_v18 = vpop.permute.xlu1 %522 }
  0xc3   : > { %v517_v20 = vpop.permute.xlu0 %516  ;;  %vm524_vm3 = vcmp.eq.s32.totalorder %v523_v18, 1 }
  0xc4   : > { %vm518_vm4 = vcmp.eq.s32.totalorder %v514_v19, %v517_v20 }
  0xc5   : > { %vm1235_vm5 = vmand %vm518_vm4, %vm524_vm3 }
 0x10f   : > { %v488_v21 = vpop.f32.mrf.mxu0 }
 0x110   : > { %v498_v23 = vmul.f32 %v496_v16, %v488_v21 }
 0x111   : > { %v771_v24 = vpop.f32.mrf.mxu0 }
 0x112   : > { %v506_v25 = vmul.f32 %v736_v22, %v498_v23 }
 0x114   : > { %v737_v26 = vclamps-f32 %v506_v25, 64.0 }
 0x116   : > { %v526_v28 = vsel %vm1235_vm5, %v737_v26, 0.0 }
 0x117   : > { %527 = vadd.xlane.f32.xlu1 %v526_v28 }
 0x1a0   : > { %v528_v29 = vpop.xlane.xlu1 %527 }
 0x1a1   : > { %v529_v30 = vmul.f32 0.015625, %v528_v29 }
 0x1a3   : > { %v530_v31 = vmul.f32 %v529_v30, %v529_v30  ;;  %v541_v41 = vmul.f32 %v540_v36, %v529_v30 }
 0x1a5   : > { %v531_v32 = vsub.f32 1.0, %v530_v31 }
 0x1a7   : > { %v532_v33 = vmax.f32 %v531_v32, 0.0 }
 0x1a9   : > { %882 = vrsqrt.f32 %v532_v33  ;;  %vm535_vm6 = vcmp.eq.f32.partialorder %v532_v33, inf  ;;  %v538_v38 = vand.u32 2147483648, %v532_v33  ;;  %vm537_vm7 = vcmp.eq.f32.partialorder %v532_v33, 0.0 }
 0x1b6   : > { %v883_v34 = vpop.eup %882 }
 0x1b7   : > { %v534_v35 = vmul.f32 %v883_v34, %v532_v33 }
 0x1b9   : > { %v536_v39 = vsel %vm535_vm6, %v532_v33, %v534_v35 }
 0x1ba   : > { %v539_v40 = vsel %vm537_vm7, %v538_v38, %v536_v39 }
 0x1bb   : > { %v543_v42 = vmul.f32 %v542_v37, %v539_v40 }
 0x1bd   : > { %v544_v43 = vsub.f32 %v541_v41, %v543_v42 }
 0x1bf   : > { %v545_v44 = vmul.f32 64.0, %v544_v43 }
 0x1c1   : > { %548 = vperm.xlu0 %880, %v545_v44  }
 0x23c   : > { %v549_v45 = vpop.permute.xlu0 %548 }
 0x23d   : > { %v551_v46 = vsel %vm1235_vm5, %v549_v45, %v737_v26 }
 0x23e   : > { %552 = vst [vmem:[%s385_s7] sm:$0xff] %v551_v46 }
 0x23f   : > { %925 = shalt.err (!%p922_p0)
}
 0x240   : > { %s926_s10 = scalar_lea.hbm %s1255_s13, 128  ;;  %s930_s27 = scalar_lea.hbm %s1344_s16, 512 }
 0x241   : > { %p927_p3 = scmp.ne.s32.totalorder %s1255_s13, %s926_s10  ;;  %p931_p4 = scmp.lt.s32.totalorder %s1255_s13, %s1344_s16 }
 0x242   : > { %p932_p7 = scmp.lt.s32.totalorder %s930_s27, %s926_s10 }
 0x243   : > { %p928_p1 = pnand %p927_p3, %p1164_p12 }
 0x244   : > { %p933_p6 = por %p932_p7, %p931_p4 }
 0x245   : > { %p929_p5 = pneg %p928_p1 }
 0x247   : > { %p934_p8 = pnand %p933_p6, %p929_p5 }
 0x249   : > { %937 = shalt.err (!%p934_p8)
}
 0x24a   : > { %774 = dma.vmem_to_hbm [thread:$0]  (%p1164_p12), %s570_s23, 128, %s1255_s13, %s554_s19  }
 0x24b PF: > { %p785_p9 = scmp.ge.s32.totalorder %s1032_s11, 2  ;;  %s581_s21 = sand.u32 1, %s992_s24  }
 0x24c   : > { %s582_s20 = scalar_lea.sflag [#allocation4], %s581_s21 }
 0x24d   : > { %p781_p10 = pnand %p785_p9, %p1177_p2 }
 0x24f   : > { %p782_p11 = pneg %p781_p10 }
 0x251   : > { %987 = dma.done.wait (%p782_p11), %s582_s20, 128  }
 0x252   : > { %989 = vsyncadd (%p782_p11), %s582_s20, 4294967168  ;;  %s23_s11 = sadd.s32 1, %s1032_s11   ;;  %s1345_s15 = sld [smem:[#allocation13_spill]] }
 0x253   : > { %p20_p13 = scmp.ge.s32.totalorder %s23_s11, 6   ;;  %s1346_s30 = sld [smem:[#allocation8_spill]] }
 0x254   : > { %s1347_s8 = sld [smem:[#allocation9_spill]]  ;;  %s1350_s24 = smov %s996_s25 }
 0x255   : > { %s1348_s9 = sld [smem:[#allocation10_spill]]  ;;  %s1351_s25 = smov %s1000_s26 }
 0x256   : > { %s1349_s10 = sld [smem:[#allocation11_spill]]  ;;  %s1352_s26 = smov %s1172_s14 }
 0x257   : > { %s1353_s27 = smov %s1008_s28  ;;  %s1354_s28 = smov %s1012_s29 }
 0x258   : > { %s1355_s29 = smov %s1345_s15  ;;  %22 = sbr.rel (!%p20_p13) target bundleno = 12 (0xc), region = 111 }
 0x25d   :  { %587 = vsyncpa [#allocation3], 1 }
 0x25e   :  { %589 = vsyncpa [#allocation3 + $0x1], 1 }
 0x25f   :  { %590 = vsyncpa [#allocation4], 1 }
 0x260   :  { %592 = vsyncpa [#allocation4 + $0x1], 1 }

</bundles_post_ra>
